<compile_context>
chip_gen: v6e
topology: v6e:2x2x1
jax: 0.10.0
libtpu: 0.0.40
codegen_flags: <defaults>
</compile_context>

<pallas_src>
import functools

import jax
import jax.numpy as jnp
from jax.experimental import pallas as pl
from jax.experimental.pallas import tpu as pltpu

LANES = 128
MAX_BLOCK_ROWS = 2048                    # 2048 x 128 f32 = 1 MiB per input tile
VMEM_LIMIT_BYTES = 32 * 1024 * 1024


def _round_up(x, m):
    return ((x + m - 1) // m) * m


def _elem_loss(pred, target, beta, inv_2beta, half_beta):
    d = pred.astype(jnp.float32) - target.astype(jnp.float32)
    ad = jnp.abs(d)
    if beta > 0.0:
        # multiply by precomputed 0.5/beta instead of a vector divide
        return jnp.where(ad < beta, inv_2beta * d * d, ad - half_beta)
    return ad        # beta == 0 -> pure L1 (matches PyTorch)


def _smooth_l1_none_kernel(pred_ref, target_ref, out_ref, *, beta, inv_2beta,
                           half_beta):
    elem = _elem_loss(pred_ref[...], target_ref[...], beta, inv_2beta, half_beta)
    out_ref[...] = elem.astype(out_ref.dtype)


def _smooth_l1_sum_kernel(pred_ref, target_ref, out_ref, *, beta, inv_2beta,
                          half_beta, block_rows, blocks_per_core, valid_rows,
                          mask_rows):
    i = pl.program_id(1)

    @pl.when(i == 0)
    def _():
        out_ref[...] = jnp.zeros_like(out_ref)

    elem = _elem_loss(pred_ref[...], target_ref[...], beta, inv_2beta, half_beta)

    if mask_rows:
        # Logical block id (core-major).  Rows past the end of the array
        # (garbage of a partial edge block, or a fully out-of-range duplicate
        # block on core 1) contribute exactly zero.
        blk = pl.program_id(0) * blocks_per_core + i
        row = jax.lax.broadcasted_iota(jnp.int32, (block_rows, LANES), 0)
        elem = jnp.where(blk * block_rows + row < valid_rows, elem, 0.0)

    # Pure VPU accumulate into the VMEM-resident output block; it is written
    # back to HBM only once per core (when the 'parallel' index changes).
    out_ref[...] += elem


class SmoothL1Loss:
    """JAX/Pallas equivalent of the PyTorch SmoothL1Loss module."""

    def __init__(self, beta=1.0):
        self.beta = float(beta)

    def __call__(self, pred, target, reduction="mean"):
        return smooth_l1_loss(pred, target, beta=self.beta, reduction=reduction)


def smooth_l1_loss(pred, target, *, beta=1.0, reduction="mean"):
    assert pred.shape == target.shape, "pred/target shapes must match"
    beta = float(beta)
    orig_shape = pred.shape
    n = pred.size
    out_dtype = jnp.promote_types(pred.dtype, target.dtype)

    if reduction not in ("mean", "sum", "none"):
        raise ValueError(f"unsupported reduction: {reduction}")

    if n == 0:
        if reduction == "none":
            return jnp.zeros(orig_shape, out_dtype)
        if reduction == "sum":
            return jnp.zeros((), out_dtype)
        return jnp.full((), jnp.nan, out_dtype)   # mean of empty, as in PyTorch

    itemsize = min(jnp.dtype(pred.dtype).itemsize, jnp.dtype(target.dtype).itemsize)
    sub = max(8, 32 // int(itemsize))          # 8 rows f32, 16 bf16, 32 int8/fp8

    rows = pl.cdiv(n, LANES)
    arr_rows = max(rows, sub)                  # only tiny inputs get row padding
    pad_elems = arr_rows * LANES - n

    flat_p = pred.reshape(-1)
    flat_t = target.reshape(-1)
    if pad_elems:                              # copy only when shapes don't tile evenly
        flat_p = jnp.pad(flat_p, (0, pad_elems))
        flat_t = jnp.pad(flat_t, (0, pad_elems))
    p2 = flat_p.reshape(arr_rows, LANES)
    t2 = flat_t.reshape(arr_rows, LANES)

    # Large tiles; split in two so both TensorCores get work on v7x.
    block_rows = min(MAX_BLOCK_ROWS, _round_up(pl.cdiv(arr_rows, 2), sub))
    inv_2beta = (0.5 / beta) if beta > 0.0 else 0.0
    half_beta = 0.5 * beta

    if reduction == "none":
        grid = (pl.cdiv(arr_rows, block_rows),)
        kernel = functools.partial(_smooth_l1_none_kernel, beta=beta,
                                   inv_2beta=inv_2beta, half_beta=half_beta)
        out2d = pl.pallas_call(
            kernel,
            out_shape=jax.ShapeDtypeStruct((arr_rows, LANES), out_dtype),
            grid_spec=pltpu.PrefetchScalarGridSpec(
                num_scalar_prefetch=0,
                grid=grid,
                in_specs=[pl.BlockSpec((block_rows, LANES), lambda i: (i, 0)),
                          pl.BlockSpec((block_rows, LANES), lambda i: (i, 0))],
                out_specs=pl.BlockSpec((block_rows, LANES), lambda i: (i, 0)),
            ),
            compiler_params=pltpu.CompilerParams(
                dimension_semantics=("parallel",),
                vmem_limit_bytes=VMEM_LIMIT_BYTES,
            ),
        )(p2, t2)
        if pad_elems:
            return out2d.reshape(-1)[:n].reshape(orig_shape)
        return out2d.reshape(orig_shape)

    scale = (1.0 / float(n)) if reduction == "mean" else 1.0

    total_blocks = pl.cdiv(arr_rows, block_rows)
    blocks_per_core = pl.cdiv(total_blocks, 2)          # leading 'parallel' axis of size 2
    clamp = (2 * blocks_per_core) > total_blocks        # odd #blocks: core 1 re-reads last block
    mask_rows = clamp or (arr_rows % block_rows != 0)

    if clamp:
        def in_idx(c, i):
            return (jnp.minimum(c * blocks_per_core + i, total_blocks - 1), 0)
    else:
        def in_idx(c, i):
            return (c * blocks_per_core + i, 0)

    kernel = functools.partial(
        _smooth_l1_sum_kernel, beta=beta, inv_2beta=inv_2beta, half_beta=half_beta,
        block_rows=block_rows, blocks_per_core=blocks_per_core,
        valid_rows=arr_rows, mask_rows=mask_rows)

    partials = pl.pallas_call(
        kernel,
        out_shape=jax.ShapeDtypeStruct((2 * block_rows, LANES), jnp.float32),
        grid_spec=pltpu.PrefetchScalarGridSpec(
            num_scalar_prefetch=0,
            grid=(2, blocks_per_core),
            in_specs=[pl.BlockSpec((block_rows, LANES), in_idx),
                      pl.BlockSpec((block_rows, LANES), in_idx)],
            out_specs=pl.BlockSpec((block_rows, LANES), lambda c, i: (c, 0)),
        ),
        compiler_params=pltpu.CompilerParams(
            dimension_semantics=("parallel", "arbitrary"),
            vmem_limit_bytes=VMEM_LIMIT_BYTES,
        ),
    )(p2, t2)

    # Tiny epilogue reduce (at most 2 * MAX_BLOCK_ROWS * 128 f32) + scale in XLA.
    return (jnp.sum(partials) * jnp.float32(scale)).astype(out_dtype)


def _reference_smooth_l1(pred, target, beta=1.0, reduction="mean"):
    d = pred.astype(jnp.float32) - target.astype(jnp.float32)
    ad = jnp.abs(d)
    if beta > 0.0:
        elem = jnp.where(ad < beta, 0.5 * d * d / beta, ad - 0.5 * beta)
    else:
        elem = ad
    if reduction == "mean":
        return jnp.mean(elem)
    if reduction == "sum":
        return jnp.sum(elem)
    return elem


if __name__ == "__main__":
    key = jax.random.PRNGKey(0)
    k1, k2, k3, k4 = jax.random.split(key, 4)

    loss_mod = SmoothL1Loss(beta=1.0)

    # 1) NCHW-style input that tiles evenly (no padding, no extra copies).
    pred = jax.random.normal(k1, (2, 4, 16, 16), dtype=jnp.float32)
    target = jax.random.normal(k2, (2, 4, 16, 16), dtype=jnp.float32)

    out_mean = jax.block_until_ready(loss_mod(pred, target, reduction="mean"))
    out_sum = jax.block_until_ready(loss_mod(pred, target, reduction="sum"))
    out_none = jax.block_until_ready(loss_mod(pred, target, reduction="none"))

    assert jnp.allclose(out_mean, _reference_smooth_l1(pred, target, 1.0, "mean"),
                        rtol=1e-5, atol=1e-6)
    assert jnp.allclose(out_sum, _reference_smooth_l1(pred, target, 1.0, "sum"),
                        rtol=1e-5, atol=1e-3)
    assert out_none.shape == pred.shape and out_none.dtype == pred.dtype
    assert jnp.allclose(out_none, _reference_smooth_l1(pred, target, 1.0, "none"),
                        rtol=1e-5, atol=1e-6)

    # 2) Ragged shape: exercises the masked partial edge block (mean) and
    #    discarded OOB output rows ('none').
    pred_r = jax.random.normal(k3, (2, 3, 50, 50), dtype=jnp.float32)
    target_r = jax.random.normal(k4, (2, 3, 50, 50), dtype=jnp.float32)
    out_mean_r = jax.block_until_ready(loss_mod(pred_r, target_r, reduction="mean"))
    out_none_r = jax.block_until_ready(loss_mod(pred_r, target_r, reduction="none"))
    assert jnp.allclose(out_mean_r, _reference_smooth_l1(pred_r, target_r, 1.0, "mean"),
                        rtol=1e-5, atol=1e-6)
    assert out_none_r.shape == pred_r.shape
    assert jnp.allclose(out_none_r, _reference_smooth_l1(pred_r, target_r, 1.0, "none"),
                        rtol=1e-5, atol=1e-6)

    # 3) Larger input with an odd number of full blocks: exercises the clamped
    #    duplicate block on the second 'parallel' core.
    pred_l = jax.random.normal(k1, (10, 1024, 128), dtype=jnp.float32)
    target_l = jax.random.normal(k2, (10, 1024, 128), dtype=jnp.float32)
    out_mean_l = jax.block_until_ready(loss_mod(pred_l, target_l, reduction="mean"))
    assert jnp.allclose(out_mean_l, _reference_smooth_l1(pred_l, target_l, 1.0, "mean"),
                        rtol=1e-4, atol=1e-5)

    # 4) bf16 inputs (16-row packed sublane tile path).
    pred_b = jax.random.normal(k3, (4, 8, 128), dtype=jnp.bfloat16)
    target_b = jax.random.normal(k4, (4, 8, 128), dtype=jnp.bfloat16)
    out_mean_b = jax.block_until_ready(loss_mod(pred_b, target_b, reduction="mean"))
    ref_mean_b = _reference_smooth_l1(pred_b, target_b, 1.0, "mean")
    assert jnp.allclose(out_mean_b.astype(jnp.float32), ref_mean_b, rtol=2e-2, atol=2e-2)

    print("KERNEL_OK")
</pallas_src>

<mosaic_0001>
module attributes {stable_mosaic.version = 11 : i64} {
  func.func @_smooth_l1_sum_kernel(%arg0: i32, %arg1: i32, %arg2: memref<8x128xf32, #tpu.memory_space<vmem>>, %arg3: memref<8x128xf32, #tpu.memory_space<vmem>>, %arg4: memref<8x128xf32, #tpu.memory_space<vmem>>) attributes {dimension_semantics = [#tpu.dimension_semantics<parallel>, #tpu.dimension_semantics<arbitrary>], iteration_bounds = array<i64: 2, 1>, scalar_prefetch = 0 : i64, scratch_operands = 0 : i64, tpu.core_type = #tpu.core_type<tc>, window_params = [{transform_indices = @transform_0, window_bounds = array<i64: 8, 128>}, {transform_indices = @transform_1, window_bounds = array<i64: 8, 128>}, {transform_indices = @transform_2, window_bounds = array<i64: 8, 128>}]} {
    %c0_i32 = arith.constant 0 : i32
    %0 = arith.cmpi eq, %arg1, %c0_i32 : i32
    %1 = arith.extui %0 : i1 to i32
    %c0_i32_0 = arith.constant 0 : i32
    %2 = arith.cmpi ne, %1, %c0_i32_0 : i32
    scf.if %2 {
      %cst_10 = arith.constant 0.000000e+00 : f32
      %18 = vector.broadcast %cst_10 : f32 to vector<8x128xf32>
      %c0_11 = arith.constant 0 : index
      %c0_12 = arith.constant 0 : index
      %19 = vector.load %arg4[%c0_11, %c0_12] : memref<8x128xf32, #tpu.memory_space<vmem>>, vector<8x128xf32>
      tpu.vector_store %arg4[%c0_11, %c0_12], %18 {strides = array<i32>} : memref<8x128xf32, #tpu.memory_space<vmem>>, vector<8x128xf32>,
    } else {
    }
    %c0 = arith.constant 0 : index
    %c0_1 = arith.constant 0 : index
    %3 = vector.load %arg2[%c0, %c0_1] : memref<8x128xf32, #tpu.memory_space<vmem>>, vector<8x128xf32>
    %c0_2 = arith.constant 0 : index
    %c0_3 = arith.constant 0 : index
    %4 = vector.load %arg3[%c0_2, %c0_3] : memref<8x128xf32, #tpu.memory_space<vmem>>, vector<8x128xf32>
    %5 = arith.subf %3, %4 : vector<8x128xf32>
    %6 = math.absf %5 : vector<8x128xf32>
    %cst = arith.constant 1.000000e+00 : f32
    %7 = vector.broadcast %cst : f32 to vector<8x128xf32>
    %8 = arith.cmpf olt, %6, %7 : vector<8x128xf32>
    %cst_4 = arith.constant 5.000000e-01 : f32
    %9 = vector.broadcast %cst_4 : f32 to vector<8x128xf32>
    %10 = arith.mulf %9, %5 : vector<8x128xf32>
    %11 = arith.mulf %10, %5 : vector<8x128xf32>
    %cst_5 = arith.constant 5.000000e-01 : f32
    %12 = vector.broadcast %cst_5 : f32 to vector<8x128xf32>
    %13 = arith.subf %6, %12 : vector<8x128xf32>
    %14 = arith.select %8, %11, %13 : vector<8x128xi1>, vector<8x128xf32>
    %c0_6 = arith.constant 0 : index
    %c0_7 = arith.constant 0 : index
    %15 = vector.load %arg4[%c0_6, %c0_7] : memref<8x128xf32, #tpu.memory_space<vmem>>, vector<8x128xf32>
    %16 = arith.addf %15, %14 : vector<8x128xf32>
    %c0_8 = arith.constant 0 : index
    %c0_9 = arith.constant 0 : index
    %17 = vector.load %arg4[%c0_8, %c0_9] : memref<8x128xf32, #tpu.memory_space<vmem>>, vector<8x128xf32>
    tpu.vector_store %arg4[%c0_8, %c0_9], %16 {strides = array<i32>} : memref<8x128xf32, #tpu.memory_space<vmem>>, vector<8x128xf32>,
    return
  }
  func.func @transform_0(%arg0: i32, %arg1: i32) -> (i32, i32) {
    %c1_i32 = arith.constant 1 : i32
    %0 = arith.muli %arg0, %c1_i32 : i32
    %1 = arith.addi %0, %arg1 : i32
    %c0_i32 = arith.constant 0 : i32
    %c0_i32_0 = arith.constant 0 : i32
    return %1, %c0_i32 : i32, i32
  }
  func.func @transform_1(%arg0: i32, %arg1: i32) -> (i32, i32) {
    %c1_i32 = arith.constant 1 : i32
    %0 = arith.muli %arg0, %c1_i32 : i32
    %1 = arith.addi %0, %arg1 : i32
    %c0_i32 = arith.constant 0 : i32
    %c0_i32_0 = arith.constant 0 : i32
    return %1, %c0_i32 : i32, i32
  }
  func.func @transform_2(%arg0: i32, %arg1: i32) -> (i32, i32) {
    %c0_i32 = arith.constant 0 : i32
    %c0_i32_0 = arith.constant 0 : i32
    return %arg0, %c0_i32 : i32, i32
  }
}

</mosaic_0001>

<bundles_post_ra>
// kernel: tpu_custom_call.1
= control target key start
LH: loop header
LB: loop body
LE: loop exit
PB: predicated region body
PF: predicated region fallthrough
CT: control target
= control target key end

     0   :  { %7 = vsyncpa [#allocation3], 0  ;;  %s756_s0 = inlined_call_operand.hbm [shape: f32[16,128], index: 0, kind: input, shape index: {}]   ;;  %s757_s1 = inlined_call_operand.hbm [shape: f32[16,128], index: 1, kind: input, shape index: {}]   ;;  %s758_s2 = inlined_call_operand.hbm [shape: f32[16,128], index: 2, kind: output, shape index: {}]  }
   0x1   :  { %9 = vsyncpa [#allocation3 + $0x1], 0 }
   0x2   :  { %10 = vsyncpa [#allocation6], 0 }
   0x3   :  { %12 = vsyncpa [#allocation6 + $0x1], 0 }
   0x4   :  { %13 = vsyncpa [#allocation4], 0 }
   0x5   :  { %15 = vsyncpa [#allocation4 + $0x1], 0  ;;  %s595_s9 = smov 0   ;;  %s597_s10 = smov 0  }
   0x6   :  { %s599_s11 = smov 0   ;;  %s601_s12 = smov 0  }
   0x7   :  { %s603_s13 = smov 0   ;;  %s605_s14 = smov 0  }
   0x8 LB: > { %s350_s15 = sadd.s32 4294967295, %s575_s14   ;;  %s351_s16 = sadd.s32 4294967294, %s575_s14   ;;  %s575_s14 = sphi %s605_s14, %s21_s14   ;;  %s571_s13 = sphi %s603_s13, %s770_s13   ;;  %s567_s12 = sphi %s601_s12, %s769_s12   ;;  %s563_s11 = sphi %s599_s11, %s768_s11   ;;  %s559_s10 = sphi %s597_s10, %s767_s10   ;;  %s555_s9 = sphi %s595_s9, %s766_s9  }
   0x9   : > { %s33_s17 = sadd.s32 1, %s571_s13  ;;  %s42_s18 = sadd.s32 1, %s563_s11 }
   0xa   : > { %p35_p0 = scmp.ge.s32.totalorder %s33_s17, 2  ;;  %p49_p1 = scmp.ne.s32.totalorder %s563_s11, %s559_s10 }
   0xb   : > { %p50_p2 = scmp.eq.s32.totalorder %s575_s14, 0  ;;  %p55_p3 = scmp.ne.s32.totalorder %s559_s10, %s555_s9 }
   0xc   : > { %s772_s17 = smov (%p35_p0, %s33_s17), 0  ;;  %p56_p5 = scmp.eq.s32.totalorder %s350_s15, 0 }
   0xd   : > { %p636_p4 = por %p50_p2, %p49_p1  ;;  %s39_s20 = ssub.s32 %s571_s13, %s772_s17 }
   0xe   : > { %p107_p6 = scmp.eq.s32.totalorder %s350_s15, 1  ;;  %p40_p7 = scmp.eq.s32.totalorder %s39_s20, 0 }
   0xf   : > { %p642_p8 = por %p56_p5, %p55_p3  ;;  %p113_p10 = scmp.eq.s32.totalorder %s351_s16, 1 }
  0x10   : > { %p646_p9 = por %p107_p6, %p49_p1  ;;  %p384_p13 = scmp.lt.s32.totalorder %s575_s14, 2 }
  0x11   : > { %s651_s23 = scalar_select %p40_p7, %s563_s11, %s42_s18  }
  0x12   : > { %p653_p11 = por %p113_p10, %p55_p3  ;;  %s660_s25 = sand.u32 1, %s563_s11  }
  0x13   : > { %s354_s26 = sshll.u32 %s660_s25, 3  ;;  %s355_s27 = sshll.u32 %s571_s13, 7 }
  0x14   : > { %s143_s30 = scalar_lea.hbm %s756_s0, %s355_s27  ;;  %s137_s3 = scalar_lea.vmem [#allocation2], %s354_s26 }
  0x15   : > { %s145_s4 = sshll.u32 %s137_s3, 4  ;;  %p669_p0 = pnand %p384_p13, %p636_p4  ;;  %s146_s4 = int_to_ptr.vmem [resolvable:$true] %s145_s4 }
  0x16   : > { %p358_p1 = scmp.ge.s32.totalorder %s575_s14, 1  ;;  %p169_p2 = scmp.lt.s32.totalorder %s575_s14, 3 }
  0x17   : > { %s134_s6 = scalar_lea.sflag [#allocation3], %s660_s25  ;;  %p437_p3 = pneg %p669_p0 }
  0x18   : > { %s448_s7 = scalar_lea.vmem %s146_s4, 128  ;;  %s577_s8 = smov [#allocation2]  }
  0x19   : > { %p449_p5 = scmp.ne.s32.totalorder %s146_s4, %s448_s7  ;;  %s453_s15 = sshll.u32 %s577_s8, 4  ;;  %s454_s15 = int_to_ptr.vmem [resolvable:$false] %s453_s15 }
  0x1a   : > { %s455_s16 = scalar_lea.vmem %s454_s15, 256  ;;  %p456_p4 = scmp.lt.s32.totalorder %s146_s4, %s454_s15 }
  0x1b   : > { %p451_p6 = pnand %p449_p5, %p437_p3  ;;  %p457_p10 = scmp.lt.s32.totalorder %s455_s16, %s448_s7 }
  0x1d   : > { %p452_p7 = pneg %p451_p6  ;;  %p458_p13 = por %p457_p10, %p456_p4 }
  0x1f   : > { %p459_p12 = pnand %p458_p13, %p452_p7 }
  0x21   : > { %462 = shalt.err (!%p459_p12)
}
  0x22   : > { %376 = dma.hbm_to_vmem [thread:$0]  (!%p669_p0), %s143_s30, 128, %s146_s4, %s134_s6  }
  0x23   : > { %p687_p5 = pnand %p358_p1, %p169_p2  ;;  %s162_s28 = scalar_lea.hbm %s757_s1, %s355_s27 }
  0x24   : > { %s156_s29 = scalar_lea.vmem [#allocation5], %s354_s26  ;;  %s153_s7 = scalar_lea.sflag [#allocation6], %s660_s25 }
  0x25   : > { %s164_s3 = sshll.u32 %s156_s29, 4  ;;  %s578_s30 = smov [#allocation5]   ;;  %s165_s3 = int_to_ptr.vmem [resolvable:$true] %s164_s3 }
  0x26   : > { %s476_s8 = scalar_lea.vmem %s165_s3, 128  ;;  %s481_s4 = sshll.u32 %s578_s30, 4  ;;  %s482_s4 = int_to_ptr.vmem [resolvable:$false] %s481_s4 }
  0x27   : > { %p477_p12 = scmp.ne.s32.totalorder %s165_s3, %s476_s8  ;;  %s483_s6 = scalar_lea.vmem %s482_s4, 256 }
  0x28   : > { %p484_p1 = scmp.lt.s32.totalorder %s165_s3, %s482_s4  ;;  %p485_p2 = scmp.lt.s32.totalorder %s483_s6, %s476_s8 }
  0x29   : > { %p479_p6 = pnand %p477_p12, %p437_p3 }
  0x2a   : > { %p486_p4 = por %p485_p2, %p484_p1 }
  0x2b   : > { %p480_p7 = pneg %p479_p6 }
  0x2d   : > { %p487_p10 = pnand %p486_p4, %p480_p7 }
  0x2f   : > { %490 = shalt.err (!%p487_p10)
}
  0x30   : > { %379 = dma.hbm_to_vmem [thread:$0]  (!%p669_p0), %s162_s28, 128, %s165_s3, %s153_s7  }
  0x31   : > { %173 = sbr.rel (%p687_p5) target bundleno = 81 (0x51), region = 28  ;;  %s703_s25 = sand.u32 (!%p687_p5), 1, %s559_s10  }
  0x32   : > { %s359_s26 = sshll.u32 (!%p687_p5), %s703_s25, 3  ;;  %s176_s27 = scalar_lea.sflag (!%p687_p5), [#allocation3], %s703_s25 }
  0x33   : > { %s179_s15 = scalar_lea.vmem (!%p687_p5), [#allocation2], %s359_s26 }
  0x36   : > { %542 = dma.done.wait (%p642_p8), %s176_s27, 128  }
  0x37   : > { %544 = vsyncadd (%p642_p8), %s176_s27, 4294967168  ;;  %s185_s5 = scalar_lea.sflag [#allocation6], %s703_s25  ;;  %s188_s16 = scalar_lea.vmem [#allocation5], %s359_s26 }
  0x38   : > { %546 = dma.done.wait (%p642_p8), %s185_s5, 128  }
  0x39   : > { %548 = vsyncadd (%p642_p8), %s185_s5, 4294967168  ;;  %v221_v0 = vld [vmem:[%s179_s15] sm:$0xff]  ;;  %v222_v1 = vld [vmem:[%s188_s16] sm:$0xff]  ;;  %s364_s18 = sshll.u32 %s567_s12, 7  ;;  %s213_s19 = scalar_lea.vmem [#allocation7], %s359_s26 }
  0x3a   : > { %v223_v2 = vsub.f32 %v221_v0, %v222_v1  ;;  %s247_s20 = sshll.u32 %s213_s19, 4  ;;  %s245_s21 = scalar_lea.hbm %s758_s2, %s364_s18  ;;  %s248_s20 = int_to_ptr.vmem [resolvable:$true] %s247_s20 }
  0x3b   : > { %s234_s3 = scalar_lea.sflag [#allocation4], %s703_s25  ;;  %s491_s7 = scalar_lea.vmem %s248_s20, 128 }
  0x3c   : > { %v224_v3 = vand.u32 2147483647, %v223_v2  ;;  %v226_v4 = vmul.f32 0.5, %v223_v2  ;;  %p492_p8 = scmp.ne.s32.totalorder %s248_s20, %s491_s7  ;;  %s579_s8 = smov [#allocation7]  }
  0x3d   : > { %s495_s30 = sshll.u32 %s579_s8, 4  ;;  %s496_s30 = int_to_ptr.vmem [resolvable:$false] %s495_s30 }
  0x3e   : > { %vm225_vm0 = vcmp.lt.f32.partialorder %v224_v3, 1.0  ;;  %v227_v5 = vmul.f32 %v226_v4, %v223_v2  ;;  %v362_v6 = vadd.f32 -0.5, %v224_v3  ;;  %p493_p0 = pnand %p492_p8, %p646_p9  ;;  %s497_s4 = scalar_lea.vmem %s496_s30, 256 }
  0x3f   : > { %p498_p13 = scmp.lt.s32.totalorder %s248_s20, %s496_s30  ;;  %p499_p5 = scmp.lt.s32.totalorder %s497_s4, %s491_s7 }
  0x40   : > { %v229_v7 = vsel %vm225_vm0, %v227_v5, %v362_v6  ;;  %p494_p3 = pneg %p493_p0 }
  0x41   : > { %232 = vst [vmem:[%s213_s19] sm:$0xff] %v229_v7  ;;  %p500_p12 = por %p499_p5, %p498_p13 }
  0x43   : > { %p501_p6 = pnand %p500_p12, %p494_p3 }
  0x45   : > { %504 = shalt.err (!%p501_p6)
}
  0x46   : > { %s505_s12 = scalar_lea.hbm %s245_s21, 128  ;;  %s509_s26 = scalar_lea.hbm %s758_s2, 256 }
  0x47   : > { %p506_p7 = scmp.ne.s32.totalorder %s245_s21, %s505_s12  ;;  %p510_p4 = scmp.lt.s32.totalorder %s245_s21, %s758_s2 }
  0x48   : > { %p511_p10 = scmp.lt.s32.totalorder %s509_s26, %s505_s12 }
  0x49   : > { %p507_p1 = pnand %p506_p7, %p646_p9 }
  0x4a   : > { %p512_p8 = por %p511_p10, %p510_p4 }
  0x4b   : > { %p508_p2 = pneg %p507_p1 }
  0x4d   : > { %p513_p0 = pnand %p512_p8, %p508_p2 }
  0x4f   : > { %516 = shalt.err (!%p513_p0)
}
  0x50   : > { %371 = dma.vmem_to_hbm [thread:$0]  (%p646_p9), %s248_s20, 128, %s245_s21, %s234_s3  }
  0x51 PF: > { %s259_s5 = sand.u32 1, %s555_s9   ;;  %p765_p3 = scmp.ge.s32.totalorder %s575_s14, 2 }
  0x52   : > { %s260_s16 = scalar_lea.sflag [#allocation4], %s259_s5 }
  0x53   : > { %p381_p13 = pnand %p765_p3, %p653_p11 }
  0x55   : > { %p382_p5 = pneg %p381_p13 }
  0x57   : > { %550 = dma.done.wait (%p382_p5), %s260_s16, 128  }
  0x58   : > { %552 = vsyncadd (%p382_p5), %s260_s16, 4294967168  ;;  %s21_s14 = sadd.s32 1, %s575_s14   ;;  %s766_s9 = smov %s559_s10 }
  0x59   : > { %p18_p12 = scmp.ge.s32.totalorder %s21_s14, 4   ;;  %s767_s10 = smov %s563_s11 }
  0x5a   : > { %s768_s11 = smov %s651_s23  ;;  %s769_s12 = smov %s571_s13 }
  0x5b   : > { %s770_s13 = smov %s772_s17  ;;  %20 = sbr.rel (!%p18_p12) target bundleno = 8 (0x8), region = 90 }
  0x60   :  { %265 = vsyncpa [#allocation3], 1 }
  0x61   :  { %267 = vsyncpa [#allocation3 + $0x1], 1 }
  0x62   :  { %268 = vsyncpa [#allocation6], 1 }
  0x63   :  { %270 = vsyncpa [#allocation6 + $0x1], 1 }
  0x64   :  { %271 = vsyncpa [#allocation4], 1 }
  0x65   :  { %273 = vsyncpa [#allocation4 + $0x1], 1 }

</bundles_post_ra>
